<compile_context>
chip_gen: v5e
topology: v5e:2x2
jax: 0.10.0
libtpu: 0.0.40
codegen_flags: <defaults>
</compile_context>

<pallas_src>
import jax
import jax.numpy as jnp
from jax.experimental import pallas as pl
from jax.experimental.pallas import tpu as pltpu


# ---------------------------------------------------------------------------
# Kernels
# ---------------------------------------------------------------------------
def _vit_input_kernel_resident(p_ref, w_ref, pos_ref, o_ref):
    # p_ref:   (1, tT, K)   patch tile for one batch element
    # w_ref:   (K, E)       full weight, VMEM-resident (index never changes)
    # pos_ref: (tT, E)      f32 positional embedding (bias folded in)
    # o_ref:   (1, tT, E)   output tile
    o_ref[0] = (jnp.dot(p_ref[0], w_ref[...],
                        preferred_element_type=jnp.float32)      # MXU, f32 acc
                + pos_ref[...]).astype(o_ref.dtype)


def _vit_input_kernel_tiled(p_ref, w_ref, pos_ref, o_ref, acc_ref):
    # K-tiled fallback: acc_ref (tT, E) f32 is resident across the K grid axis.
    k = pl.program_id(2)

    @pl.when(k == 0)
    def _init():
        acc_ref[...] = jnp.zeros_like(acc_ref)

    acc_ref[...] += jnp.dot(p_ref[0], w_ref[...],
                            preferred_element_type=jnp.float32)  # MXU

    @pl.when(k == pl.num_programs(2) - 1)
    def _finalize():
        o_ref[0] = (acc_ref[...] + pos_ref[...]).astype(o_ref.dtype)


# ---------------------------------------------------------------------------
# Tile / VMEM-budget selection helpers
# ---------------------------------------------------------------------------
def _vmem_budget_bytes():
    """Per-core VMEM budget: physical capacity * 3/4 (headroom for Pallas
    internal scratch / semaphores).  128 MiB (v5e/v6e) -> 96 MiB,
    64 MiB (v7x) -> 48 MiB."""
    cap = 64 * 1024 * 1024  # conservative default (v7x per-TC physical VMEM)
    try:
        info = pltpu.get_tpu_info()
        c = getattr(info, "vmem_capacity_bytes", None)
        if c:
            cap = int(c)
    except Exception:
        pass
    return (cap * 3) // 4


def _aligned_divisors(n, mult, max_tile):
    """Divisors of n that are <= max_tile and multiples of `mult`, descending.
    Falls back to [n] (full extent is always a legal block shape)."""
    cands = [d for d in range(min(n, max_tile), 0, -1)
             if n % d == 0 and d % mult == 0]
    return cands if cands else [n]


# ---------------------------------------------------------------------------
# Wrapper
# ---------------------------------------------------------------------------
def vit_input_pallas(patches, weight, bias, pos_embed, *,
                     compute_dtype=jnp.bfloat16,
                     out_dtype=jnp.float32,
                     max_t_tile=1024, max_k_tile=2048):
    """patches: (B, T, K); weight: (K, E); bias: (E,); pos_embed: (T, E)."""
    B, T, K = patches.shape
    Kw, E = weight.shape
    assert Kw == K, (Kw, K)

    # Fold Linear bias into the positional embedding (x@W + b) + pos == x@W + (pos + b).
    pos_b = pos_embed.astype(jnp.float32) + bias.astype(jnp.float32)[None, :]

    # bf16 operands hit native MXU rate and halve HBM->VMEM bytes for the two
    # largest streams; accumulation stays f32.
    p = patches.astype(compute_dtype)
    w = weight.astype(compute_dtype)

    in_isz = jnp.dtype(compute_dtype).itemsize
    out_isz = jnp.dtype(out_dtype).itemsize
    sub_mult = 16 if in_isz == 2 else 8         # bf16 packs 16 rows / vreg

    budget = _vmem_budget_bytes()

    def est(tT, tK, resident):
        w_bytes = (K if resident else tK) * E * in_isz
        w_bufs = 1 if resident else 2           # constant index -> one fetch
        b = (2 * tT * tK * in_isz               # patch tile, double-buffered
             + w_bufs * w_bytes                 # weight
             + 2 * tT * E * 4                   # pos tile (f32, varies with t)
             + 2 * tT * E * out_isz)            # output tile
        if not resident:
            b += tT * E * 4                     # accumulator scratch
        return b

    t_cands = _aligned_divisors(T, sub_mult, max_t_tile)

    # ---- Preferred path: full-K weight kept VMEM-resident --------------------
    tT = None
    for cand in t_cands:
        if est(cand, K, resident=True) <= budget:
            tT = cand
            break

    if tT is not None:
        resident, tK, nK = True, K, 1
    else:
        # ---- Fallback: K-tiled reduction with f32 accumulator ----------------
        resident = False
        k_cands = _aligned_divisors(K, 128, max_k_tile)
        pick = None
        for tc in t_cands:
            for kc in k_cands:
                if est(tc, kc, resident=False) <= budget:
                    pick = (tc, kc)
                    break
            if pick is not None:
                break
        tT, tK = pick if pick is not None else (t_cands[-1], k_cands[-1])
        nK = K // tK

    nT = T // tT

    # v7x megacore: keep at least 2 parallel grid iterations when possible.
    if B * nT < 2:
        for cand in t_cands:
            if cand < tT and T // cand >= 2:
                tT, nT = cand, T // cand
                break

    vmem_est = est(tT, tK, resident)
    vmem_limit = int(min(max(int(vmem_est * 1.5), 16 * 1024 * 1024), budget))

    if resident:
        grid = (B, nT)
        in_specs = [
            pl.BlockSpec((1, tT, K), lambda b, t: (b, t, 0)),
            pl.BlockSpec((K, E), lambda b, t: (0, 0)),      # fetched once
            pl.BlockSpec((tT, E), lambda b, t: (t, 0)),
        ]
        out_specs = pl.BlockSpec((1, tT, E), lambda b, t: (b, t, 0))
        scratch = []
        kernel = _vit_input_kernel_resident
        dimsem = ("parallel", "parallel")
    else:
        grid = (B, nT, nK)                                   # K innermost
        in_specs = [
            pl.BlockSpec((1, tT, tK), lambda b, t, k: (b, t, k)),
            pl.BlockSpec((tK, E), lambda b, t, k: (k, 0)),
            pl.BlockSpec((tT, E), lambda b, t, k: (t, 0)),
        ]
        out_specs = pl.BlockSpec((1, tT, E), lambda b, t, k: (b, t, 0))
        scratch = [pltpu.VMEM((tT, E), jnp.float32)]
        kernel = _vit_input_kernel_tiled
        dimsem = ("parallel", "parallel", "arbitrary")

    return pl.pallas_call(
        kernel,
        out_shape=jax.ShapeDtypeStruct((B, T, E), out_dtype),
        grid_spec=pltpu.PrefetchScalarGridSpec(
            num_scalar_prefetch=0,
            grid=grid,
            in_specs=in_specs,
            out_specs=out_specs,
            scratch_shapes=scratch,
        ),
        compiler_params=pltpu.CompilerParams(
            dimension_semantics=dimsem,
            vmem_limit_bytes=vmem_limit,
            # Let XLA fuse the patchify reshape/transpose (+ bf16 cast) into
            # the patches operand instead of materializing (B, T, K) in HBM.
            allow_input_fusion=[True, False, False],
        ),
    )(p, w, pos_b)


# ---------------------------------------------------------------------------
# Glue: 3D unfold (patchify) in plain JAX, matching torch UnfoldNd ordering
# ---------------------------------------------------------------------------
def image_to_patches_3d(x, patch_size):
    """x: (B, C, D, H, W) -> (B, T, C*pd*ph*pw), torch-Unfold feature order."""
    B, C, D, H, W = x.shape
    pd, ph, pw = patch_size
    nd, nh, nw = D // pd, H // ph, W // pw
    x = x.reshape(B, C, nd, pd, nh, ph, nw, pw)
    # -> (B, nd, nh, nw, C, pd, ph, pw): patch index (d, h, w) row-major,
    # feature vector ordered channel-major then kernel offsets (torch Unfold).
    x = x.transpose(0, 2, 4, 6, 1, 3, 5, 7)
    return x.reshape(B, nd * nh * nw, C * pd * ph * pw)


def vision_transformer_input(x, weight, bias, pos_embed, patch_size, *,
                             compute_dtype=jnp.bfloat16,
                             out_dtype=jnp.float32):
    patches = image_to_patches_3d(x.astype(compute_dtype), patch_size)
    return vit_input_pallas(patches, weight, bias, pos_embed,
                            compute_dtype=compute_dtype, out_dtype=out_dtype)


# ---------------------------------------------------------------------------
# Reference (pure JAX) for correctness checking
# ---------------------------------------------------------------------------
def vision_transformer_input_ref(x, weight, bias, pos_embed, patch_size,
                                 compute_dtype=jnp.float32):
    patches = image_to_patches_3d(x.astype(compute_dtype), patch_size)
    y = jnp.dot(patches, weight.astype(compute_dtype),
                preferred_element_type=jnp.float32)
    return y + bias[None, :] + pos_embed


if __name__ == "__main__":
    # Small shapes consistent with the module's forward:
    #   image_size=(8,8,8), patch_size=(2,2,2), in_channels=4, embed_size=32
    image_size = (8, 8, 8)
    patch_size = (2, 2, 2)
    in_channels = 4
    embed_size = 32
    B = 2

    num_patches = ((image_size[0] // patch_size[0])
                   * (image_size[1] // patch_size[1])
                   * (image_size[2] // patch_size[2]))                # 64
    K = patch_size[0] * patch_size[1] * patch_size[2] * in_channels   # 32

    key = jax.random.PRNGKey(0)
    kx, kw, kb, kp = jax.random.split(key, 4)

    # Deterministic synthetic parameters (no checkpoint load).
    x = jax.random.normal(kx, (B, in_channels, *image_size), dtype=jnp.float32)
    # torch Linear weight is (E, K); we store the transpose (K, E) directly.
    weight = jax.random.normal(kw, (K, embed_size), dtype=jnp.float32) * 0.05
    bias = jax.random.normal(kb, (embed_size,), dtype=jnp.float32) * 0.05
    pos_embed = jax.random.normal(kp, (num_patches, embed_size),
                                  dtype=jnp.float32)

    out = vision_transformer_input(x, weight, bias, pos_embed, patch_size)
    out = jax.block_until_ready(out)
    assert out.shape == (B, num_patches, embed_size), out.shape

    # Tight check vs. a reference using the same bf16 MXU operands / f32 accum.
    ref_bf16 = vision_transformer_input_ref(x, weight, bias, pos_embed,
                                            patch_size,
                                            compute_dtype=jnp.bfloat16)
    assert jnp.allclose(out, ref_bf16, atol=5e-3, rtol=5e-3), \
        float(jnp.max(jnp.abs(out - ref_bf16)))

    # Loose sanity check vs. the full-f32 torch-equivalent reference.
    ref_f32 = vision_transformer_input_ref(x, weight, bias, pos_embed,
                                           patch_size)
    assert jnp.allclose(out, ref_f32, atol=1e-1, rtol=1e-1), \
        float(jnp.max(jnp.abs(out - ref_f32)))

    print("KERNEL_OK")
</pallas_src>

<mosaic_0001>
module attributes {stable_mosaic.version = 11 : i64} {
  func.func @_vit_input_kernel_resident(%arg0: i32, %arg1: i32, %arg2: memref<1x64x32xbf16, #tpu.memory_space<vmem>>, %arg3: memref<32x32xbf16, #tpu.memory_space<vmem>>, %arg4: memref<64x32xf32, #tpu.memory_space<vmem>>, %arg5: memref<1x64x32xf32, #tpu.memory_space<vmem>>) attributes {dimension_semantics = [#tpu.dimension_semantics<parallel>, #tpu.dimension_semantics<parallel>], iteration_bounds = array<i64: 2, 1>, scalar_prefetch = 0 : i64, scratch_operands = 0 : i64, tpu.core_type = #tpu.core_type<tc>, window_params = [{transform_indices = @transform_0, window_bounds = array<i64: 1, 64, 32>}, {pipeline_mode = #tpu.pipeline_mode<synchronous>, transform_indices = @transform_1, window_bounds = array<i64: 32, 32>}, {transform_indices = @transform_2, window_bounds = array<i64: 64, 32>}, {transform_indices = @transform_3, window_bounds = array<i64: 1, 64, 32>}]} {
    %c0 = arith.constant 0 : index
    %c0_0 = arith.constant 0 : index
    %c0_1 = arith.constant 0 : index
    %0 = vector.load %arg2[%c0, %c0_0, %c0_1] : memref<1x64x32xbf16, #tpu.memory_space<vmem>>, vector<1x64x32xbf16>
    %1 = vector.shape_cast %0 : vector<1x64x32xbf16> to vector<64x32xbf16>
    %c0_2 = arith.constant 0 : index
    %c0_3 = arith.constant 0 : index
    %2 = vector.load %arg3[%c0_2, %c0_3] : memref<32x32xbf16, #tpu.memory_space<vmem>>, vector<32x32xbf16>
    %cst = arith.constant dense<0.000000e+00> : vector<64x32xf32>
    %3 = tpu.matmul %1, %2, %cst {dimension_numbers = #tpu.dot_dimension_numbers<[1], [0], [0], [1], [0, 0, 1, 1], [], []>} : vector<64x32xbf16>, vector<32x32xbf16>, vector<64x32xf32> -> vector<64x32xf32>
    %c0_4 = arith.constant 0 : index
    %c0_5 = arith.constant 0 : index
    %4 = vector.load %arg4[%c0_4, %c0_5] : memref<64x32xf32, #tpu.memory_space<vmem>>, vector<64x32xf32>
    %5 = arith.addf %3, %4 : vector<64x32xf32>
    %c0_6 = arith.constant 0 : index
    %c0_7 = arith.constant 0 : index
    %c0_8 = arith.constant 0 : index
    %6 = vector.load %arg5[%c0_6, %c0_7, %c0_8] : memref<1x64x32xf32, #tpu.memory_space<vmem>>, vector<1x64x32xf32>
    %7 = vector.shape_cast %6 : vector<1x64x32xf32> to vector<64x32xf32>
    %8 = vector.shape_cast %5 : vector<64x32xf32> to vector<1x64x32xf32>
    tpu.vector_store %arg5[%c0_6, %c0_7, %c0_8], %8 {strides = array<i32>} : memref<1x64x32xf32, #tpu.memory_space<vmem>>, vector<1x64x32xf32>,
    return
  }
  func.func @transform_0(%arg0: i32, %arg1: i32) -> (i32, i32, i32) {
    %c0_i32 = arith.constant 0 : i32
    %c0_i32_0 = arith.constant 0 : i32
    return %arg0, %arg1, %c0_i32 : i32, i32, i32
  }
  func.func @transform_1(%arg0: i32, %arg1: i32) -> (i32, i32) {
    %c0_i32 = arith.constant 0 : i32
    %c0_i32_0 = arith.constant 0 : i32
    %c0_i32_1 = arith.constant 0 : i32
    return %c0_i32, %c0_i32_0 : i32, i32
  }
  func.func @transform_2(%arg0: i32, %arg1: i32) -> (i32, i32) {
    %c0_i32 = arith.constant 0 : i32
    %c0_i32_0 = arith.constant 0 : i32
    return %arg1, %c0_i32 : i32, i32
  }
  func.func @transform_3(%arg0: i32, %arg1: i32) -> (i32, i32, i32) {
    %c0_i32 = arith.constant 0 : i32
    %c0_i32_0 = arith.constant 0 : i32
    return %arg0, %arg1, %c0_i32 : i32, i32, i32
  }
}

</mosaic_0001>

<bundles_post_ra>
// kernel: tpu_custom_call.1
= control target key start
LH: loop header
LB: loop body
LE: loop exit
PB: predicated region body
PF: predicated region fallthrough
CT: control target
= control target key end

     0   :  { %s559_s12 = smov 0   ;;  %s561_s13 = smov 0   ;;  %s634_s0 = inlined_call_operand.vmem [shape: bf16[2,64,32], index: 0, kind: input, shape index: {}]   ;;  %s635_s1 = inlined_call_operand.vmem [shape: bf16[32,32], index: 1, kind: input, shape index: {}]   ;;  %s636_s2 = inlined_call_operand.vmem [shape: f32[64,32], index: 2, kind: input, shape index: {}]   ;;  %s637_s3 = inlined_call_operand.vmem [shape: f32[2,64,32], index: 3, kind: output, shape index: {}]  }
   0x1   :  { %s563_s14 = smov 0  }
   0x2 LB: > { %s25_s15 = sadd.s32 1, %s533_s13  ;;  %p442_p0 = scmp.ge.s32.totalorder %s537_s14, 1  ;;  %s537_s14 = sphi %s563_s14, %s13_s14   ;;  %s533_s13 = sphi %s561_s13, %s639_s13   ;;  %s529_s12 = sphi %s559_s12, %s638_s12  }
   0x3   : > { %p27_p1 = scmp.ge.s32.totalorder %s25_s15, 2  ;;  %p169_p2 = scmp.lt.s32.totalorder %s537_s14, 3 }
   0x5   : > { %s641_s15 = smov (%p27_p1, %s25_s15), 0  ;;  %p170_p3 = pnand %p442_p0, %p169_p2 }
   0x6   : > { %p207_p4 = scmp.lt.s32.totalorder (!%p170_p3), %s529_s12, 1 }
   0x7   : > { %173 = sbr.rel (%p170_p3) target bundleno = 165 (0xa5), region = 32 }
   0xc   : > { %v484_v0 = vld [vmem:[%s635_s1 + $0x8] sm:$0xff]  ;;  %v483_v1 = vld [vmem:[%s635_s1] sm:$0xff]  ;;  %s643_s12 = smov (!%p207_p4, %s529_s12), 1  ;;  %vm285_vm0 = vcmask 261120   ;;  %v247_v7 = vld [vmem:[%s636_s2 + $0x10] sm:$0xff] }
   0xd   : > { %304 = vmatpush.bf16.msra.mxu0 %v484_v0  ;;  %485 = vmatpush.bf16.msra.mxu1 %v484_v0  ;;  %s477_s20 = sshll.u32 %s643_s12, 5  ;;  %s478_s24 = sshll.u32 %s643_s12, 6  ;;  %v245_v6 = vld [vmem:[%s636_s2] sm:$0xff]  ;;  %v251_v13 = vld [vmem:[%s636_s2 + $0x30] sm:$0xff]  ;;  %v246_v14 = vld [vmem:[%s636_s2 + $0x8] sm:$0xff] }
   0xe   : > { %486 = vmatpush.bf16.msra.mxu2 %v484_v0  ;;  %487 = vmatpush.bf16.msra.mxu3 %v484_v0  ;;  %s214_s23 = scalar_lea.vmem %s634_s0, %s477_s20  ;;  %s230_s4 = scalar_lea.vmem %s637_s3, %s478_s24  ;;  %v249_v12 = vld [vmem:[%s636_s2 + $0x20] sm:$0xff]  ;;  %v248_v15 = vld [vmem:[%s636_s2 + $0x18] sm:$0xff]  ;;  %v250_v24 = vld [vmem:[%s636_s2 + $0x28] sm:$0xff] }
   0xf   : > { %v479_v2 = vld [vmem:[%s214_s23] sm:$0xff]  ;;  %v480_v3 = vld [vmem:[%s214_s23 + $0x8] sm:$0xff]  ;;  %v481_v4 = vld [vmem:[%s214_s23 + $0x10] sm:$0xff] }
  0x10   : > { %v482_v5 = vld [vmem:[%s214_s23 + $0x18] sm:$0xff] }
  0x11   : > { %305 = vmatpush.bf16.msra.mxu0 %v483_v1  ;;  %488 = vmatpush.bf16.msra.mxu1 %v483_v1  ;;  %v252_v25 = vld [vmem:[%s636_s2 + $0x38] sm:$0xff] }
  0x12   : > { %489 = vmatpush.bf16.msra.mxu2 %v483_v1  ;;  %490 = vmatpush.bf16.msra.mxu3 %v483_v1 }
  0x14   : > { %471 = vmatmul.msk.bf16.vlgmr.msra.gmra.mxu0 %vm285_vm0, %v479_v2  ;;  %472 = vmatmul.msk.bf16.vlgmr.msra.gmra.mxu1 %vm285_vm0, %v480_v3 }
  0x15   : > { %473 = vmatmul.msk.bf16.vlgmr.msra.gmra.mxu2 %vm285_vm0, %v481_v4  ;;  %474 = vmatmul.msk.bf16.vlgmr.msra.gmra.mxu3 %vm285_vm0, %v482_v5 }
  0x91   : > { %v307_v8 = vpop.f32.mrf.mxu0  ;;  %v312_v9 = vpop.f32.mrf.mxu1 }
  0x92   : > { %v308_v10 = vadd.f32 %v307_v8, %v245_v6  ;;  %v313_v11 = vadd.f32 %v312_v9, %v247_v7 }
  0x94   : > { %327 = vst.msk [vmem:[%s230_s4] sm:$0xff] %vm285_vm0, %v308_v10 }
  0x95   : > { %329 = vst.msk [vmem:[%s230_s4 + $0x10] sm:$0xff] %vm285_vm0, %v313_v11 }
  0x98   : > { %v317_v16 = vpop.f32.mrf.mxu2  ;;  %v322_v17 = vpop.f32.mrf.mxu3 }
  0x99   : > { %v318_v18 = vadd.f32 %v317_v16, %v249_v12  ;;  %v323_v19 = vadd.f32 %v322_v17, %v251_v13  ;;  %v309_v20 = vpop.f32.mrf.mxu0  ;;  %v314_v21 = vpop.f32.mrf.mxu1 }
  0x9a   : > { %v310_v22 = vadd.f32 %v309_v20, %v246_v14  ;;  %v315_v23 = vadd.f32 %v314_v21, %v248_v15 }
  0x9b   : > { %331 = vst.msk [vmem:[%s230_s4 + $0x20] sm:$0xff] %vm285_vm0, %v318_v18 }
  0x9c   : > { %333 = vst.msk [vmem:[%s230_s4 + $0x30] sm:$0xff] %vm285_vm0, %v323_v19 }
  0x9d   : > { %328 = vst.msk [vmem:[%s230_s4 + $0x8] sm:$0xff] %vm285_vm0, %v310_v22 }
  0x9e   : > { %330 = vst.msk [vmem:[%s230_s4 + $0x18] sm:$0xff] %vm285_vm0, %v315_v23 }
  0xa0   : > { %v319_v26 = vpop.f32.mrf.mxu2  ;;  %v324_v27 = vpop.f32.mrf.mxu3 }
  0xa1   : > { %v320_v28 = vadd.f32 %v319_v26, %v250_v24  ;;  %v325_v29 = vadd.f32 %v324_v27, %v252_v25 }
  0xa3   : > { %332 = vst.msk [vmem:[%s230_s4 + $0x28] sm:$0xff] %vm285_vm0, %v320_v28 }
  0xa4   : > { %334 = vst.msk [vmem:[%s230_s4 + $0x38] sm:$0xff] %vm285_vm0, %v325_v29 }
  0xa5 PF: > { %s13_s14 = sadd.s32 1, %s537_s14   ;;  %s638_s12 = smov %s533_s13 }
  0xa6   : > { %p10_p5 = scmp.ge.s32.totalorder %s13_s14, 4   ;;  %s639_s13 = smov %s641_s15 }
  0xa8   :  { %12 = sbr.rel (!%p10_p5) target bundleno = 2 (0x2), region = 65 }

</bundles_post_ra>
